<compile_context>
chip_gen: v7x
topology: tpu7x:2x2x1
jax: 0.10.0
libtpu: 0.0.40
codegen_flags: <defaults>
</compile_context>

<pallas_src>
import functools

import jax
import jax.numpy as jnp
from jax.experimental import pallas as pl
from jax.experimental.pallas import tpu as pltpu

LANES = 128
TARGET_BLOCK_ELEMS = 1 << 20           # ~4 MiB f32 / ~2 MiB bf16 per input block (padded accounting)
VMEM_LIMIT_BYTES = 48 * 1024 * 1024    # headroom over 32 MiB default; < v7x 64 MiB/TC physical


def _round_up(x, m):
    return ((x + m - 1) // m) * m


def _binary_reg_kernel(x_ref, o_ref, *, total_b, block_b, per_core):
    """Accumulates sum(1 / clamp(|x - 0.5|, 0.01)) into a per-core resident slab."""
    p = pl.program_id(0)   # core / slab-range split   ("parallel")
    i = pl.program_id(1)   # reduction step            ("arbitrary")

    @pl.when(i == 0)
    def _():
        o_ref[...] = jnp.zeros_like(o_ref)

    x = x_ref[...].astype(jnp.float32)
    d = jnp.maximum(jnp.abs(x - 0.5), 0.01)
    # EUP approx reciprocal + one Newton step (~1e-6 rel err): keeps the 4-wide
    # VALU slot free (v7x / bf16 streaming) instead of a multi-op exact divide.
    r = pl.reciprocal(d, approx=True)
    r = r * (2.0 - d * r)

    blk = p * per_core + i              # logical block index along the slab axis
    rem = total_b - blk * block_b       # in-range slabs left in this block

    @pl.when(rem >= block_b)
    def _():                            # full block: unmasked VPU adds only
        o_ref[...] += r.sum(axis=0, keepdims=True)

    @pl.when(rem < block_b)
    def _():                            # tail (or duplicate) block: mask stale slabs
        sl = jax.lax.broadcasted_iota(jnp.int32, r.shape, 0)
        o_ref[...] += jnp.where(sl < rem, r, 0.0).sum(axis=0, keepdims=True)


def binary_reg(pred, alpha=0.1):
    """alpha * mean(1 / clamp(|pred - 0.5|, min=0.01)) over all elements."""
    total = int(pred.size)

    # Collapse ONLY the leading dims; the last two dims stay native so the
    # reshape is layout-preserving (no HBM relayout copy before the kernel).
    if pred.ndim == 0:
        x3 = pred.reshape(1, 1, 1)
    elif pred.ndim == 1:
        x3 = pred.reshape(1, 1, pred.shape[0])
    elif pred.ndim == 2:
        x3 = pred.reshape(1, *pred.shape)
    else:
        x3 = pred.reshape(-1, pred.shape[-2], pred.shape[-1])
    B, H, W = x3.shape

    itemsize = jnp.dtype(x3.dtype).itemsize
    sublanes = max(8, 32 // max(1, itemsize))                    # 8 f32 / 16 bf16 / 32 int8
    padded_slab = _round_up(H, sublanes) * _round_up(W, LANES)   # VMEM elems per (H, W) slab

    # NOTE: a single (H, W) slab larger than ~16 MiB f32 would need H-tiling as
    # well; prediction maps for this regularizer are far below that.
    block_b = max(1, min(B, TARGET_BLOCK_ELEMS // padded_slab))
    nblk = pl.cdiv(B, block_b)
    ncores = 2 if nblk >= 2 else 1       # megacore split only when it can pay
    per_core = pl.cdiv(nblk, ncores)

    def in_idx(p, i):
        # Clamp so a duplicate (empty) step on the second core never indexes a
        # block past the end of the array; its contribution is fully masked.
        return (jnp.minimum(p * per_core + i, nblk - 1), 0, 0)

    kernel = functools.partial(
        _binary_reg_kernel, total_b=B, block_b=block_b, per_core=per_core)

    partials = pl.pallas_call(
        kernel,
        out_shape=jax.ShapeDtypeStruct((ncores, H, W), jnp.float32),
        grid_spec=pltpu.PrefetchScalarGridSpec(
            num_scalar_prefetch=0,
            grid=(ncores, per_core),
            in_specs=[pl.BlockSpec((block_b, H, W), in_idx)],
            out_specs=pl.BlockSpec((1, H, W), lambda p, i: (p, 0, 0)),
        ),
        compiler_params=pltpu.CompilerParams(
            dimension_semantics=("parallel", "arbitrary"),
            vmem_limit_bytes=VMEM_LIMIT_BYTES,
        ),
        cost_estimate=pl.CostEstimate(
            flops=8 * total,
            transcendentals=total,
            bytes_accessed=total * itemsize,
        ),
    )(x3)

    recip_sum = jnp.sum(partials)        # tiny (ncores, H, W) final reduce
    return (alpha / total) * recip_sum


if __name__ == "__main__":
    key = jax.random.PRNGKey(0)
    # Module forward takes a single prediction tensor (e.g. sigmoid outputs), NCHW.
    pred = jax.random.uniform(key, (2, 4, 16, 16), dtype=jnp.float32)

    loss = jax.block_until_ready(binary_reg(pred, alpha=0.1))

    # Pure-JAX reference check of the same semantics (exact divide).
    ref = 0.1 * jnp.mean(1.0 / jnp.maximum(jnp.abs(pred - 0.5), 0.01))
    assert jnp.allclose(loss, ref, rtol=1e-5, atol=1e-6), (loss, ref)

    print("KERNEL_OK")
</pallas_src>

<mosaic_0001>
module attributes {stable_mosaic.version = 11 : i64} {
  func.func @_binary_reg_kernel(%arg0: i32, %arg1: i32, %arg2: memref<8x16x16xf32, #tpu.memory_space<vmem>>, %arg3: memref<1x16x16xf32, #tpu.memory_space<vmem>>) attributes {dimension_semantics = [#tpu.dimension_semantics<parallel>, #tpu.dimension_semantics<arbitrary>], iteration_bounds = array<i64: 1, 1>, scalar_prefetch = 0 : i64, scratch_operands = 0 : i64, tpu.core_type = #tpu.core_type<tc>, window_params = [{transform_indices = @transform_0, window_bounds = array<i64: 8, 16, 16>}, {transform_indices = @transform_1, window_bounds = array<i64: 1, 16, 16>}]} {
    %c0_i32 = arith.constant 0 : i32
    %0 = arith.cmpi eq, %arg1, %c0_i32 : i32
    %1 = arith.extui %0 : i1 to i32
    %c0_i32_0 = arith.constant 0 : i32
    %2 = arith.cmpi ne, %1, %c0_i32_0 : i32
    scf.if %2 {
      %cst_10 = arith.constant 0.000000e+00 : f32
      %24 = vector.broadcast %cst_10 : f32 to vector<1x16x16xf32>
      %c0_11 = arith.constant 0 : index
      %c0_12 = arith.constant 0 : index
      %c0_13 = arith.constant 0 : index
      %25 = vector.load %arg3[%c0_11, %c0_12, %c0_13] : memref<1x16x16xf32, #tpu.memory_space<vmem>>, vector<1x16x16xf32>
      tpu.vector_store %arg3[%c0_11, %c0_12, %c0_13], %24 {strides = array<i32>} : memref<1x16x16xf32, #tpu.memory_space<vmem>>, vector<1x16x16xf32>,
    } else {
    }
    %c0 = arith.constant 0 : index
    %c0_1 = arith.constant 0 : index
    %c0_2 = arith.constant 0 : index
    %3 = vector.load %arg2[%c0, %c0_1, %c0_2] : memref<8x16x16xf32, #tpu.memory_space<vmem>>, vector<8x16x16xf32>
    %cst = arith.constant 5.000000e-01 : f32
    %4 = vector.broadcast %cst : f32 to vector<8x16x16xf32>
    %5 = arith.subf %3, %4 : vector<8x16x16xf32>
    %6 = math.absf %5 : vector<8x16x16xf32>
    %cst_3 = arith.constant 0.00999999977 : f32
    %7 = vector.broadcast %cst_3 : f32 to vector<8x16x16xf32>
    %8 = arith.maximumf %6, %7 : vector<8x16x16xf32>
    %9 = tpu.reciprocal %8 {approx = true} : vector<8x16x16xf32> -> vector<8x16x16xf32>
    %10 = arith.mulf %8, %9 : vector<8x16x16xf32>
    %cst_4 = arith.constant 2.000000e+00 : f32
    %11 = vector.broadcast %cst_4 : f32 to vector<8x16x16xf32>
    %12 = arith.subf %11, %10 : vector<8x16x16xf32>
    %13 = arith.mulf %9, %12 : vector<8x16x16xf32>
    %c1_i32 = arith.constant 1 : i32
    %14 = arith.muli %arg0, %c1_i32 : i32
    %15 = arith.addi %14, %arg1 : i32
    %c8_i32 = arith.constant 8 : i32
    %16 = arith.muli %15, %c8_i32 : i32
    %c8_i32_5 = arith.constant 8 : i32
    %17 = arith.subi %c8_i32_5, %16 : i32
    %c8_i32_6 = arith.constant 8 : i32
    %18 = arith.cmpi sge, %17, %c8_i32_6 : i32
    %19 = arith.extui %18 : i1 to i32
    %c0_i32_7 = arith.constant 0 : i32
    %20 = arith.cmpi ne, %19, %c0_i32_7 : i32
    scf.if %20 {
      %c0_10 = arith.constant 0 : index
      %c0_11 = arith.constant 0 : index
      %c0_12 = arith.constant 0 : index
      %24 = vector.load %arg3[%c0_10, %c0_11, %c0_12] : memref<1x16x16xf32, #tpu.memory_space<vmem>>, vector<1x16x16xf32>
      %cst_13 = arith.constant dense<0.000000e+00> : vector<16x16xf32>
      %25 = vector.multi_reduction <add>, %13, %cst_13 [0] : vector<8x16x16xf32> to vector<16x16xf32>
      %26 = vector.shape_cast %25 : vector<16x16xf32> to vector<1x16x16xf32>
      %27 = arith.addf %24, %26 : vector<1x16x16xf32>
      %c0_14 = arith.constant 0 : index
      %c0_15 = arith.constant 0 : index
      %c0_16 = arith.constant 0 : index
      %28 = vector.load %arg3[%c0_14, %c0_15, %c0_16] : memref<1x16x16xf32, #tpu.memory_space<vmem>>, vector<1x16x16xf32>
      tpu.vector_store %arg3[%c0_14, %c0_15, %c0_16], %27 {strides = array<i32>} : memref<1x16x16xf32, #tpu.memory_space<vmem>>, vector<1x16x16xf32>,
    } else {
    }
    %c8_i32_8 = arith.constant 8 : i32
    %21 = arith.cmpi slt, %17, %c8_i32_8 : i32
    %22 = arith.extui %21 : i1 to i32
    %c0_i32_9 = arith.constant 0 : i32
    %23 = arith.cmpi ne, %22, %c0_i32_9 : i32
    scf.if %23 {
      %24 = tpu.iota {dimensions = array<i32: 0>} : vector<8x16x16xi32>
      %c0_10 = arith.constant 0 : index
      %c0_11 = arith.constant 0 : index
      %c0_12 = arith.constant 0 : index
      %25 = vector.load %arg3[%c0_10, %c0_11, %c0_12] : memref<1x16x16xf32, #tpu.memory_space<vmem>>, vector<1x16x16xf32>
      %26 = vector.broadcast %17 : i32 to vector<8x16x16xi32>
      %27 = arith.cmpi slt, %24, %26 : vector<8x16x16xi32>
      %cst_13 = arith.constant 0.000000e+00 : f32
      %28 = vector.broadcast %cst_13 : f32 to vector<8x16x16xf32>
      %29 = arith.select %27, %13, %28 : vector<8x16x16xi1>, vector<8x16x16xf32>
      %cst_14 = arith.constant dense<0.000000e+00> : vector<16x16xf32>
      %30 = vector.multi_reduction <add>, %29, %cst_14 [0] : vector<8x16x16xf32> to vector<16x16xf32>
      %31 = vector.shape_cast %30 : vector<16x16xf32> to vector<1x16x16xf32>
      %32 = arith.addf %25, %31 : vector<1x16x16xf32>
      %c0_15 = arith.constant 0 : index
      %c0_16 = arith.constant 0 : index
      %c0_17 = arith.constant 0 : index
      %33 = vector.load %arg3[%c0_15, %c0_16, %c0_17] : memref<1x16x16xf32, #tpu.memory_space<vmem>>, vector<1x16x16xf32>
      tpu.vector_store %arg3[%c0_15, %c0_16, %c0_17], %32 {strides = array<i32>} : memref<1x16x16xf32, #tpu.memory_space<vmem>>, vector<1x16x16xf32>,
    } else {
    }
    return
  }
  func.func @transform_0(%arg0: i32, %arg1: i32) -> (i32, i32, i32) {
    %c1_i32 = arith.constant 1 : i32
    %0 = arith.muli %arg0, %c1_i32 : i32
    %1 = arith.addi %0, %arg1 : i32
    %c0_i32 = arith.constant 0 : i32
    %2 = arith.minsi %1, %c0_i32 : i32
    %c0_i32_0 = arith.constant 0 : i32
    %c0_i32_1 = arith.constant 0 : i32
    %c0_i32_2 = arith.constant 0 : i32
    return %2, %c0_i32_0, %c0_i32_1 : i32, i32, i32
  }
  func.func @transform_1(%arg0: i32, %arg1: i32) -> (i32, i32, i32) {
    %c0_i32 = arith.constant 0 : i32
    %c0_i32_0 = arith.constant 0 : i32
    %c0_i32_1 = arith.constant 0 : i32
    return %arg0, %c0_i32, %c0_i32_0 : i32, i32, i32
  }
}

</mosaic_0001>

<bundles_post_ra>
// kernel: tpu_custom_call.1
= control target key start
LH: loop header
LB: loop body
LE: loop exit
PB: predicated region body
PF: predicated region fallthrough
CT: control target
= control target key end

     0   :  { %6 = vsyncpa [#allocation3], 0  ;;  %s492_s0 = inlined_call_operand.hbm [shape: f32[8,16,16], index: 0, kind: input, shape index: {}]   ;;  %s493_s1 = inlined_call_operand.hbm [shape: f32[1,16,16], index: 1, kind: output, shape index: {}]  }
   0x1   :  { %7 = vsyncpa [#allocation4], 0  ;;  %s399_s6 = smov [#allocation2]   ;;  %s351_s10 = scalar_lea.hbm %s492_s0, 2048 }
   0x2   :  { %s20_s7 = sshll.u32 %s399_s6, 4  ;;  %p352_p0 = scmp.ne.s32.totalorder %s492_s0, %s351_s10  ;;  %s21_s7 = int_to_ptr.vmem [resolvable:$true] %s20_s7 }
   0x3   :  { %p355_p1 = scmp.lt.u32.totalorder %s351_s10, %s492_s0 }
   0x5   :  { %p357_p2 = pnand %p355_p1, %p352_p0 }
   0x7   :  { %360 = shalt.err (!%p357_p2)
}
   0x8   :  { %s361_s15 = scalar_lea.vmem %s21_s7, 2048  ;;  %p366_p4 = scmp.lt.s32.totalorder %s21_s7, %s21_s7 }
   0x9   :  { %p362_p3 = scmp.ne.s32.totalorder %s21_s7, %s361_s15  ;;  %p367_p5 = scmp.lt.s32.totalorder %s361_s15, %s361_s15 }
   0xb   :  { %p368_p6 = por %p367_p5, %p366_p4 }
   0xd   :  { %p369_p7 = pnand %p368_p6, %p362_p3 }
   0xf   :  { %372 = shalt.err (!%p369_p7)
}
  0x10   :  { %s400_s16 = smov 128   ;;  %s401_s17 = smov 8  }
  0x11   :  { %26 = dma.hbm_to_vmem [thread:$0]  %s492_s0, 2048, %s21_s7, [#allocation3], %s400_s16, %s400_s16, %s401_s17  }
  0x12   :  { %395 = dma.done.wait [#allocation3], 2048  }
  0x13   :  { %396 = vsyncadd [#allocation3], 4294965248  ;;  %vm38_vm0 = vcmask 130048   ;;  %v402_v0 = vmov 0.0   ;;  %v41_v1 = vld [vmem:[#allocation2] sm:$0xff]  ;;  %v43_v2 = vld [vmem:[#allocation2 + $0x10] sm:$0xff] }
  0x14   :  { %39 = vst.msk [vmem:[#allocation5] sm:$0xff] %vm38_vm0, %v402_v0  ;;  %40 = vst.msk [vmem:[#allocation5 + $0x8] sm:$0xff] %vm38_vm0, %v402_v0  ;;  %v45_v3 = vld [vmem:[#allocation2 + $0x20] sm:$0xff]  ;;  %v47_v4 = vld [vmem:[#allocation2 + $0x30] sm:$0xff]  ;;  %v298_v7 = vadd.f32 -0.5, %v41_v1  ;;  %v300_v8 = vadd.f32 -0.5, %v43_v2 }
  0x15   :  { %v49_v5 = vld [vmem:[#allocation2 + $0x40] sm:$0xff]  ;;  %v51_v6 = vld [vmem:[#allocation2 + $0x50] sm:$0xff]  ;;  %v302_v9 = vadd.f32 -0.5, %v45_v3  ;;  %v304_v12 = vadd.f32 -0.5, %v47_v4  ;;  %v42_v33 = vld [vmem:[#allocation2 + $0x8] sm:$0xff]  ;;  %s403_s0 = smov [#allocation5]  }
  0x16   :  { %v53_v10 = vld [vmem:[#allocation2 + $0x60] sm:$0xff]  ;;  %v55_v11 = vld [vmem:[#allocation2 + $0x70] sm:$0xff]  ;;  %v306_v13 = vadd.f32 -0.5, %v49_v5  ;;  %v308_v14 = vadd.f32 -0.5, %v51_v6  ;;  %v73_v17 = vand.u32 2147483647, %v298_v7 }
  0x17   :  { %v310_v15 = vadd.f32 -0.5, %v53_v10  ;;  %v312_v16 = vadd.f32 -0.5, %v55_v11  ;;  %v75_v18 = vand.u32 2147483647, %v300_v8  ;;  %v77_v19 = vand.u32 2147483647, %v302_v9 }
  0x18   :  { %v79_v20 = vand.u32 2147483647, %v304_v12  ;;  %v81_v21 = vand.u32 2147483647, %v306_v13  ;;  %v83_v22 = vand.u32 2147483647, %v308_v14 }
  0x19   :  { %v85_v23 = vand.u32 2147483647, %v310_v15  ;;  %v87_v24 = vand.u32 2147483647, %v312_v16  ;;  %v89_v25 = vmax.f32 %v73_v17, 0.01 }
  0x1a   :  { %v91_v26 = vmax.f32 %v75_v18, 0.01  ;;  %v93_v27 = vmax.f32 %v77_v19, 0.01  ;;  %v95_v28 = vmax.f32 %v79_v20, 0.01 }
  0x1b   :  { %v431_v29 = vmax.f32 %v81_v21, 0.01  ;;  %v433_v30 = vmax.f32 %v83_v22, 0.01  ;;  %v435_v31 = vmax.f32 %v85_v23, 0.01  ;;  %319 = vrcp.f32 %v89_v25 }
  0x1c   :  { %v437_v32 = vmax.f32 %v87_v24, 0.01  ;;  %v44_v34 = vld [vmem:[#allocation2 + $0x18] sm:$0xff]  ;;  %321 = vrcp.f32 %v91_v26  ;;  %v46_v35 = vld [vmem:[#allocation2 + $0x28] sm:$0xff]  ;;  %v299_v38 = vadd.f32 -0.5, %v42_v33  ;;  %s284_s20 = sshll.u32 %s403_s0, 4  ;;  %s285_s20 = int_to_ptr.vmem [resolvable:$true] %s284_s20 }
  0x1d   :  { %v48_v36 = vld [vmem:[#allocation2 + $0x38] sm:$0xff]  ;;  %v50_v37 = vld [vmem:[#allocation2 + $0x48] sm:$0xff]  ;;  %v301_v39 = vadd.f32 -0.5, %v44_v34  ;;  %323 = vrcp.f32 %v93_v27  ;;  %v303_v43 = vadd.f32 -0.5, %v46_v35  ;;  %s373_s21 = scalar_lea.vmem %s285_s20, 256  ;;  %p378_p9 = scmp.lt.s32.totalorder %s285_s20, %s285_s20 }
  0x1e   :  { %v52_v40 = vld [vmem:[#allocation2 + $0x58] sm:$0xff]  ;;  %v54_v41 = vld [vmem:[#allocation2 + $0x68] sm:$0xff]  ;;  %v305_v44 = vadd.f32 -0.5, %v48_v36  ;;  %v307_v45 = vadd.f32 -0.5, %v50_v37  ;;  %325 = vrcp.f32 %v95_v28  ;;  %v74_v49 = vand.u32 2147483647, %v299_v38  ;;  %p374_p8 = scmp.ne.s32.totalorder %s285_s20, %s373_s21  ;;  %p379_p10 = scmp.lt.s32.totalorder %s373_s21, %s373_s21 }
  0x1f   :  { %v56_v42 = vld [vmem:[#allocation2 + $0x78] sm:$0xff]  ;;  %v309_v46 = vadd.f32 -0.5, %v52_v40  ;;  %v311_v47 = vadd.f32 -0.5, %v54_v41  ;;  %327 = vrcp.f32 %v431_v29  ;;  %v76_v50 = vand.u32 2147483647, %v301_v39 }
  0x20   :  { %v313_v48 = vadd.f32 -0.5, %v56_v42  ;;  %v78_v51 = vand.u32 2147483647, %v303_v43  ;;  %329 = vrcp.f32 %v433_v30  ;;  %v80_v52 = vand.u32 2147483647, %v305_v44  ;;  %p380_p11 = por %p379_p10, %p378_p9 }
  0x21   :  { %v82_v53 = vand.u32 2147483647, %v307_v45  ;;  %v84_v54 = vand.u32 2147483647, %v309_v46  ;;  %331 = vrcp.f32 %v435_v31  ;;  %v86_v55 = vand.u32 2147483647, %v311_v47 }
  0x22   :  { %v88_v56 = vand.u32 2147483647, %v313_v48  ;;  %v90_v57 = vmax.f32 %v74_v49, 0.01  ;;  %333 = vrcp.f32 %v437_v32  ;;  %v92_v58 = vmax.f32 %v76_v50, 0.01  ;;  %p381_p12 = pnand %p380_p11, %p374_p8 }
  0x23   :  { %v94_v59 = vmax.f32 %v78_v51, 0.01  ;;  %v96_v60 = vmax.f32 %v80_v52, 0.01  ;;  %v98_v61 = vmax.f32 %v82_v53, 0.01 }
  0x24   :  { %335 = vrcp.f32 %v90_v57  ;;  %v443_v62 = vmax.f32 %v84_v54, 0.01  ;;  %v445_v0 = vmax.f32 %v86_v55, 0.01  ;;  %v447_v3 = vmax.f32 %v88_v56, 0.01 }
  0x25   :  { %337 = vrcp.f32 %v92_v58  ;;  %v320_v63 = vpop.eup %319 }
  0x26   :  { %339 = vrcp.f32 %v94_v59  ;;  %v322_v1 = vpop.eup %321  ;;  %v121_v2 = vmul.f32 %v320_v63, %v89_v25 }
  0x27   :  { %341 = vrcp.f32 %v96_v60  ;;  %v324_v4 = vpop.eup %323  ;;  %v123_v5 = vmul.f32 %v322_v1, %v91_v26 }
  0x28   :  { %343 = vrcp.f32 %v98_v61  ;;  %v326_v6 = vpop.eup %325  ;;  %v125_v7 = vmul.f32 %v324_v4, %v93_v27  ;;  %v137_v8 = vsub.f32 2.0, %v121_v2 }
  0x29   :  { %345 = vrcp.f32 %v443_v62  ;;  %v328_v9 = vpop.eup %327  ;;  %v127_v10 = vmul.f32 %v326_v6, %v95_v28  ;;  %v139_v11 = vsub.f32 2.0, %v123_v5 }
  0x2a   :  { %347 = vrcp.f32 %v445_v0  ;;  %v330_v12 = vpop.eup %329  ;;  %v129_v13 = vmul.f32 %v328_v9, %v431_v29  ;;  %v141_v14 = vsub.f32 2.0, %v125_v7  ;;  %v153_v15 = vmul.f32 %v320_v63, %v137_v8 }
  0x2b   :  { %349 = vrcp.f32 %v447_v3  ;;  %v332_v16 = vpop.eup %331  ;;  %v131_v17 = vmul.f32 %v330_v12, %v433_v30  ;;  %v143_v18 = vsub.f32 2.0, %v127_v10  ;;  %v155_v19 = vmul.f32 %v322_v1, %v139_v11 }
  0x2c   :  { %v334_v20 = vpop.eup %333  ;;  %v133_v21 = vmul.f32 %v332_v16, %v435_v31  ;;  %v145_v22 = vsub.f32 2.0, %v129_v13  ;;  %v157_v23 = vmul.f32 %v324_v4, %v141_v14  ;;  %v179_v24 = vsel %vm38_vm0, %v153_v15, 0.0  ;;  %v176_v15 = vld [vmem:[#allocation5] sm:$0xff] }
  0x2d   :  { %v135_v26 = vmul.f32 %v334_v20, %v437_v32  ;;  %v147_v27 = vsub.f32 2.0, %v131_v17  ;;  %v159_v28 = vmul.f32 %v326_v6, %v143_v18  ;;  %v180_v29 = vsel %vm38_vm0, %v155_v19, 0.0 }
  0x2e   :  { %v336_v25 = vpop.eup %335  ;;  %v149_v34 = vsub.f32 2.0, %v133_v21  ;;  %v161_v35 = vmul.f32 %v328_v9, %v145_v22  ;;  %v181_v30 = vadd.f32 %v180_v29, %v179_v24  ;;  %v182_v36 = vsel %vm38_vm0, %v157_v23, 0.0 }
  0x2f   :  { %v338_v33 = vpop.eup %337  ;;  %v151_v38 = vsub.f32 2.0, %v135_v26  ;;  %v163_v31 = vmul.f32 %v330_v12, %v147_v27  ;;  %v184_v39 = vsel %vm38_vm0, %v159_v28, 0.0  ;;  %v122_v40 = vmul.f32 %v336_v25, %v90_v57 }
  0x30   :  { %v340_v37 = vpop.eup %339  ;;  %v183_v42 = vadd.f32 %v182_v36, %v181_v30  ;;  %v124_v43 = vmul.f32 %v338_v33, %v92_v58  ;;  %v165_v44 = vmul.f32 %v332_v16, %v149_v34  ;;  %v186_v45 = vsel %vm38_vm0, %v161_v35, 0.0  ;;  %v177_v35 = vld [vmem:[#allocation5 + $0x8] sm:$0xff] }
  0x31   :  { %v342_v41 = vpop.eup %341  ;;  %v126_v46 = vmul.f32 %v340_v37, %v94_v59  ;;  %v167_v49 = vmul.f32 %v334_v20, %v151_v38  ;;  %v138_v52 = vsub.f32 2.0, %v122_v40  ;;  %v188_v54 = vsel %vm38_vm0, %v163_v31, 0.0 }
  0x32   :  { %v344_v32 = vpop.eup %343  ;;  %v128_v47 = vmul.f32 %v342_v41, %v96_v60  ;;  %v185_v50 = vadd.f32 %v184_v39, %v183_v42  ;;  %v140_v56 = vsub.f32 2.0, %v124_v43  ;;  %v190_v59 = vsel %vm38_vm0, %v165_v44, 0.0 }
  0x33   :  { %v346_v48 = vpop.eup %345  ;;  %v130_v51 = vmul.f32 %v344_v32, %v98_v61  ;;  %v142_v57 = vsub.f32 2.0, %v126_v46  ;;  %v154_v5 = vmul.f32 %v336_v25, %v138_v52 }
  0x34   :  { %v348_v53 = vpop.eup %347  ;;  %v132_v55 = vmul.f32 %v346_v48, %v443_v62  ;;  %v187_v58 = vadd.f32 %v186_v45, %v185_v50  ;;  %v144_v2 = vsub.f32 2.0, %v128_v47  ;;  %v156_v61 = vmul.f32 %v338_v33, %v140_v56 }
  0x35   :  { %v350_v63 = vpop.eup %349  ;;  %v134_v1 = vmul.f32 %v348_v53, %v445_v0  ;;  %v146_v4 = vsub.f32 2.0, %v130_v51  ;;  %v158_v8 = vmul.f32 %v340_v37, %v142_v57  ;;  %v192_v62 = vsel %vm38_vm0, %v167_v49, 0.0 }
  0x36   :  { %v136_v60 = vmul.f32 %v350_v63, %v447_v3  ;;  %v189_v6 = vadd.f32 %v188_v54, %v187_v58  ;;  %v148_v7 = vsub.f32 2.0, %v132_v55  ;;  %v160_v9 = vmul.f32 %v342_v41, %v144_v2 }
  0x37   :  { %v150_v10 = vsub.f32 2.0, %v134_v1  ;;  %v194_v11 = vsel %vm38_vm0, %v154_v5, 0.0  ;;  %v162_v13 = vmul.f32 %v344_v32, %v146_v4  ;;  %v195_v0 = vsel %vm38_vm0, %v156_v61, 0.0 }
  0x38   :  { %v191_v12 = vadd.f32 %v190_v59, %v189_v6  ;;  %v197_v14 = vsel %vm38_vm0, %v158_v8, 0.0  ;;  %v196_v16 = vadd.f32 %v195_v0, %v194_v11  ;;  %v152_v17 = vsub.f32 2.0, %v136_v60 }
  0x39   :  { %v164_v18 = vmul.f32 %v346_v48, %v148_v7  ;;  %v199_v19 = vsel %vm38_vm0, %v160_v9, 0.0  ;;  %v166_v22 = vmul.f32 %v348_v53, %v150_v10  ;;  %v201_v23 = vsel %vm38_vm0, %v162_v13, 0.0 }
  0x3a   :  { %v193_v3 = vadd.f32 %v192_v62, %v191_v12  ;;  %v198_v20 = vadd.f32 %v197_v14, %v196_v16  ;;  %v168_v25 = vmul.f32 %v350_v63, %v152_v17 }
  0x3b   :  { %v203_v26 = vsel %vm38_vm0, %v164_v18, 0.0  ;;  %v205_v28 = vsel %vm38_vm0, %v166_v22, 0.0 }
  0x3c   :  { %v209_v21 = vadd.f32 %v193_v3, %v176_v15  ;;  %v200_v24 = vadd.f32 %v199_v19, %v198_v20  ;;  %v207_v33 = vsel %vm38_vm0, %v168_v25, 0.0 }
  0x3e   :  { %211 = vst.msk [vmem:[#allocation5] sm:$0xff] %vm38_vm0, %v209_v21  ;;  %v202_v27 = vadd.f32 %v201_v23, %v200_v24 }
  0x40   :  { %v204_v29 = vadd.f32 %v203_v26, %v202_v27 }
  0x42   :  { %v206_v34 = vadd.f32 %v205_v28, %v204_v29 }
  0x44   :  { %v208_v30 = vadd.f32 %v207_v33, %v206_v34 }
  0x46   :  { %v210_v36 = vadd.f32 %v208_v30, %v177_v35 }
  0x48   :  { %212 = vst.msk [vmem:[#allocation5 + $0x8] sm:$0xff] %vm38_vm0, %v210_v36 }
  0x49   :  { %384 = shalt.err (!%p381_p12)
}
  0x4a   :  { %s385_s24 = scalar_lea.hbm %s493_s1, 256 }
  0x4b   :  { %p386_p13 = scmp.ne.s32.totalorder %s493_s1, %s385_s24  ;;  %p389_p0 = scmp.lt.u32.totalorder %s385_s24, %s493_s1 }
  0x4d   :  { %p391_p1 = pnand %p389_p0, %p386_p13 }
  0x4f   :  { %394 = shalt.err (!%p391_p1)
}
  0x50   :  { %290 = dma.vmem_to_hbm [thread:$0]  %s285_s20, 256, %s493_s1, [#allocation4], %s400_s16, %s400_s16, %s401_s17  }
  0x51   :  { %397 = dma.done.wait [#allocation4], 256  }
  0x52   :  { %398 = vsyncadd [#allocation4], 4294967040 }
  0x53   :  { %294 = vsyncpa [#allocation3], 1 }
  0x54   :  { %295 = vsyncpa [#allocation4], 1 }

</bundles_post_ra>
